<compile_context>
chip_gen: v7x
topology: tpu7x:2x2x1
jax: 0.10.0
libtpu: 0.0.40
codegen_flags: <defaults>
</compile_context>

<pallas_src>
import jax
import jax.numpy as jnp
from jax import lax
from jax.experimental import pallas as pl
from jax.experimental.pallas import tpu as pltpu

CLUSTER_NUM = 10     # module default cluster_num=10
N_PATCHES = 16       # small synthetic bag size per cluster
PATCH_DIM = 128      # small patch_dim (module default 512)
DIM = 64             # must be 64: siamese head hard-codes Linear(64, 32)
SIAM_HIDDEN = 32
FUSED_W = 128        # lane-dense fused matmul width: [e (64) | pre-tanh (32) | sat | pad]


def image_branch_kernel(x_ref, w_ref, p_ref, out_ref):
    # x_ref: (C*N, P)  w_ref: (P, 128)  p_ref: (18, 128) packed params  out_ref: (C, D)
    c, d = out_ref.shape
    m = x_ref.shape[0]
    n = m // c
    b_row = p_ref.shape[0] - 2
    w2_row = p_ref.shape[0] - 1

    b_big = p_ref[b_row:b_row + 1, :]        # (1,128) fused bias (incl. tanh-saturation lane)
    w2 = p_ref[w2_row:w2_row + 1, :]         # (1,128) siamese head row (incl. b2 in the sat lane)
    pos = p_ref[0:c, 0:d]                    # (C, D)  pos_embedding

    # Single lane-dense MXU pass over all clusters/patches at once.
    # lanes [:D] = embedding e, [D:D+32] = pre-tanh hidden, lane D+32 = 20.0, rest = 0.
    f = jnp.dot(x_ref[...], w_ref[...], preferred_element_type=jnp.float32) + b_big  # (C*N,128)

    # Attention score per patch: tanh on the EUP slot, masked w2 row on the VPU, lane
    # reduction on the XLU.  w2 is zero outside [D, D+33), so tanh of the e lanes and the
    # zero-pad lanes contributes nothing; lane D+32 contributes tanh(20)*b2 == b2.
    a = jnp.sum(jnp.tanh(f) * w2, axis=-1, keepdims=True)                            # (C*N,1)

    # Per-cluster attention pooling rep[r] = sum_{patch in cluster r} a * f  as a
    # segment-sum matmul; seg built with range compares (no integer division).
    row = lax.broadcasted_iota(jnp.int32, (c, m), 0)
    col = lax.broadcasted_iota(jnp.int32, (c, m), 1)
    lo = row * n
    seg = jnp.where((col >= lo) & (col < lo + n), 1.0, 0.0)                           # (C, C*N)
    rep = jnp.dot(seg, a * f, preferred_element_type=jnp.float32)                     # (C, 128)

    out_ref[...] = rep[:, 0:d] + pos


def pack_params(params):
    """Pre-pack the module parameters into 2 DMA-friendly slabs (done once, off the hot path)."""
    p, d = params["w_emb"].shape
    h = params["w1"].shape[1]
    assert d + h + 1 <= FUSED_W
    hi = lax.Precision.HIGHEST
    w_comb = jnp.dot(params["w_emb"], params["w1"], precision=hi)                     # (P, H)
    b1p = jnp.dot(params["b_emb"], params["w1"], precision=hi) + params["b1"]         # (1, H)

    w_big = jnp.zeros((p, FUSED_W), jnp.float32)
    w_big = w_big.at[:, :d].set(params["w_emb"])
    w_big = w_big.at[:, d:d + h].set(w_comb)
    # column d+h stays all-zero -> f[:, d+h] == bias == 20.0 for every patch.

    c = params["pos"].shape[1]
    rows = ((c + 7) // 8) * 8 + 2            # pos rows (8-aligned) + bias row + w2 row
    small = jnp.zeros((rows, FUSED_W), jnp.float32)
    small = small.at[:c, :d].set(params["pos"][0])
    small = small.at[rows - 2, :d].set(params["b_emb"][0])
    small = small.at[rows - 2, d:d + h].set(b1p[0])
    small = small.at[rows - 2, d + h].set(20.0)              # tanh(20.0) == 1.0f
    small = small.at[rows - 1, d:d + h].set(params["w2"][:, 0])
    small = small.at[rows - 1, d + h].set(params["b2"][0, 0])  # b2 injected via the sat lane
    return w_big, small


def image_branch_forward(x, w_big, small, cls_token):
    c, n, p = x.shape
    d = DIM
    x2 = x.reshape(c * n, p)                 # flatten all bags: (C*N, P)

    vmem = pl.BlockSpec(memory_space=pltpu.MemorySpace.VMEM)
    rep = pl.pallas_call(
        image_branch_kernel,
        out_shape=jax.ShapeDtypeStruct((c, d), jnp.float32),
        in_specs=[vmem, vmem, vmem],         # 3 input DMAs total
        out_specs=vmem,
    )(x2, w_big, small)

    feat = rep[None]                                          # (1, C, D)
    cls = jnp.broadcast_to(cls_token, (1, 1, d))              # cls_token.expand(b, -1, -1)
    return jnp.concatenate([cls, feat], axis=1)               # (1, C + 1, D)


def make_params(key):
    ks = jax.random.split(key, 8)
    s = 0.02
    return {
        "w_emb": (jax.random.normal(ks[0], (PATCH_DIM, DIM)) * s).astype(jnp.float32),
        "b_emb": (jax.random.normal(ks[5], (1, DIM)) * s).astype(jnp.float32),
        "w1": (jax.random.normal(ks[1], (DIM, SIAM_HIDDEN)) * s).astype(jnp.float32),
        "b1": (jax.random.normal(ks[6], (1, SIAM_HIDDEN)) * s).astype(jnp.float32),
        "w2": (jax.random.normal(ks[2], (SIAM_HIDDEN, 1)) * s).astype(jnp.float32),
        "b2": (jax.random.normal(ks[7], (1, 1)) * s).astype(jnp.float32),
        "pos": jax.random.normal(ks[3], (1, CLUSTER_NUM, DIM)).astype(jnp.float32),
        "cls_token": jax.random.normal(ks[4], (1, 1, DIM)).astype(jnp.float32),
    }


def reference_forward(x, params):
    # pure-JAX mirror of the PyTorch forward (dropout = identity at inference)
    feats = []
    for i in range(x.shape[0]):
        rep = x[i] @ params["w_emb"] + params["b_emb"]                                  # (N, D)
        a = jnp.tanh(rep @ params["w1"] + params["b1"]) @ params["w2"] + params["b2"]   # (N, 1)
        feats.append(a.T @ rep)                                                         # (1, D)
    h = jnp.concatenate(feats, axis=0)                                                  # (C, D)
    feat = h[None, :, :] + params["pos"]                                                # (1, C, D)
    cls = jnp.broadcast_to(params["cls_token"], (1, 1, h.shape[1]))
    return jnp.concatenate([cls, feat], axis=1)


if __name__ == "__main__":
    key = jax.random.PRNGKey(0)
    k_x, k_p = jax.random.split(key)
    x = jax.random.normal(k_x, (CLUSTER_NUM, N_PATCHES, PATCH_DIM), jnp.float32)
    params = make_params(k_p)

    w_big, small = pack_params(params)
    out = jax.block_until_ready(
        image_branch_forward(x, w_big, small, params["cls_token"]))

    ref = reference_forward(x, params)
    assert out.shape == (1, CLUSTER_NUM + 1, DIM), out.shape
    err = float(jnp.max(jnp.abs(out - ref)))
    assert jnp.allclose(out, ref, atol=2e-4, rtol=2e-4), err
    print("KERNEL_OK")
</pallas_src>

<mosaic_0001>
module attributes {stable_mosaic.version = 11 : i64} {
  func.func @image_branch_kernel(%arg0: memref<160x128xf32, #tpu.memory_space<vmem>>, %arg1: memref<128x128xf32, #tpu.memory_space<vmem>>, %arg2: memref<18x128xf32, #tpu.memory_space<vmem>>, %arg3: memref<10x64xf32, #tpu.memory_space<vmem>>) attributes {dimension_semantics = [], scalar_prefetch = 0 : i64, scratch_operands = 0 : i64, tpu.core_type = #tpu.core_type<tc>} {
    %c16 = arith.constant 16 : index
    %c0 = arith.constant 0 : index
    %0 = vector.load %arg2[%c16, %c0] : memref<18x128xf32, #tpu.memory_space<vmem>>, vector<1x128xf32>
    %c17 = arith.constant 17 : index
    %c0_0 = arith.constant 0 : index
    %1 = vector.load %arg2[%c17, %c0_0] : memref<18x128xf32, #tpu.memory_space<vmem>>, vector<1x128xf32>
    %c0_1 = arith.constant 0 : index
    %c0_2 = arith.constant 0 : index
    %2 = vector.load %arg2[%c0_1, %c0_2] : memref<18x128xf32, #tpu.memory_space<vmem>>, vector<10x64xf32>
    %c0_3 = arith.constant 0 : index
    %c0_4 = arith.constant 0 : index
    %3 = vector.load %arg0[%c0_3, %c0_4] : memref<160x128xf32, #tpu.memory_space<vmem>>, vector<160x128xf32>
    %c0_5 = arith.constant 0 : index
    %c0_6 = arith.constant 0 : index
    %4 = vector.load %arg1[%c0_5, %c0_6] : memref<128x128xf32, #tpu.memory_space<vmem>>, vector<128x128xf32>
    %cst = arith.constant dense<0.000000e+00> : vector<160x128xf32>
    %5 = tpu.matmul %3, %4, %cst {dimension_numbers = #tpu.dot_dimension_numbers<[1], [0], [0], [1], [0, 0, 1, 1], [], []>} : vector<160x128xf32>, vector<128x128xf32>, vector<160x128xf32> -> vector<160x128xf32>
    %6 = vector.broadcast %0 : vector<1x128xf32> to vector<160x128xf32>
    %7 = arith.addf %5, %6 : vector<160x128xf32>
    %8 = math.tanh %7 : vector<160x128xf32>
    %9 = vector.broadcast %1 : vector<1x128xf32> to vector<160x128xf32>
    %10 = arith.mulf %8, %9 : vector<160x128xf32>
    %cst_7 = arith.constant dense<0.000000e+00> : vector<160xf32>
    %11 = vector.multi_reduction <add>, %10, %cst_7 [1] : vector<160x128xf32> to vector<160xf32>
    %12 = vector.shape_cast %11 : vector<160xf32> to vector<160x1xf32>
    %13 = tpu.iota {dimensions = array<i32: 0>} : vector<10x160xi32>
    %14 = tpu.iota {dimensions = array<i32: 1>} : vector<10x160xi32>
    %c16_i32 = arith.constant 16 : i32
    %15 = vector.broadcast %c16_i32 : i32 to vector<10x160xi32>
    %16 = arith.muli %13, %15 : vector<10x160xi32>
    %17 = arith.cmpi sge, %14, %16 : vector<10x160xi32>
    %c16_i32_8 = arith.constant 16 : i32
    %18 = vector.broadcast %c16_i32_8 : i32 to vector<10x160xi32>
    %19 = arith.addi %16, %18 : vector<10x160xi32>
    %20 = arith.cmpi slt, %14, %19 : vector<10x160xi32>
    %21 = arith.andi %17, %20 : vector<10x160xi1>
    %cst_9 = arith.constant 1.000000e+00 : f32
    %cst_10 = arith.constant 0.000000e+00 : f32
    %22 = vector.broadcast %cst_9 : f32 to vector<10x160xf32>
    %23 = vector.broadcast %cst_10 : f32 to vector<10x160xf32>
    %24 = arith.select %21, %22, %23 : vector<10x160xi1>, vector<10x160xf32>
    %25 = vector.broadcast %12 : vector<160x1xf32> to vector<160x128xf32>
    %26 = arith.mulf %25, %7 : vector<160x128xf32>
    %cst_11 = arith.constant dense<0.000000e+00> : vector<10x128xf32>
    %27 = tpu.matmul %24, %26, %cst_11 {dimension_numbers = #tpu.dot_dimension_numbers<[1], [0], [0], [1], [0, 0, 1, 1], [], []>} : vector<10x160xf32>, vector<160x128xf32>, vector<10x128xf32> -> vector<10x128xf32>
    %28 = vector.extract_strided_slice %27 {offsets = [0, 0], sizes = [10, 64], strides = [1, 1]} : vector<10x128xf32> to vector<10x64xf32>
    %29 = arith.addf %28, %2 : vector<10x64xf32>
    %c0_12 = arith.constant 0 : index
    %c0_13 = arith.constant 0 : index
    %30 = vector.load %arg3[%c0_12, %c0_13] : memref<10x64xf32, #tpu.memory_space<vmem>>, vector<10x64xf32>
    tpu.vector_store %arg3[%c0_12, %c0_13], %29 {strides = array<i32>} : memref<10x64xf32, #tpu.memory_space<vmem>>, vector<10x64xf32>,
    return
  }
}

</mosaic_0001>

<bundles_post_ra>
// kernel: tpu_custom_call.1
= control target key start
LH: loop header
LB: loop body
LE: loop exit
PB: predicated region body
PF: predicated region fallthrough
CT: control target
= control target key end

     0   :  { %8 = vsyncpa [#allocation3], 0  ;;  %s1057_s0 = inlined_call_operand.hbm [shape: f32[160,128], index: 0, kind: input, shape index: {}]   ;;  %s1058_s1 = inlined_call_operand.hbm [shape: f32[128,128], index: 1, kind: input, shape index: {}]   ;;  %s1059_s2 = inlined_call_operand.hbm [shape: f32[18,128], index: 2, kind: input, shape index: {}]   ;;  %s1060_s3 = inlined_call_operand.hbm [shape: f32[10,64], index: 3, kind: output, shape index: {}]  }
   0x1   :  { %9 = vsyncpa [#allocation6], 0 }
   0x2   :  { %10 = vsyncpa [#allocation4], 0  ;;  %s810_s12 = smov [#allocation5]   ;;  %s811_s14 = smov [#allocation2]  }
   0x3   :  { %s28_s13 = sshll.u32 %s810_s12, 4  ;;  %s16_s15 = sshll.u32 %s811_s14, 4  ;;  %s29_s13 = int_to_ptr.vmem [resolvable:$true] %s28_s13  ;;  %s839_s15 = int_to_ptr.vmem [resolvable:$true] %s16_s15 }
   0x4   :  { %s716_s18 = scalar_lea.hbm %s1058_s1, 2048 }
   0x5   :  { %p717_p0 = scmp.ne.s32.totalorder %s1058_s1, %s716_s18  ;;  %p720_p1 = scmp.lt.u32.totalorder %s716_s18, %s1058_s1 }
   0x7   :  { %p722_p2 = pnand %p720_p1, %p717_p0 }
   0x9   :  { %725 = shalt.err (!%p722_p2)
}
   0xa   :  { %s726_s23 = scalar_lea.vmem %s29_s13, 2048  ;;  %p731_p4 = scmp.lt.s32.totalorder %s29_s13, %s29_s13 }
   0xb   :  { %p727_p3 = scmp.ne.s32.totalorder %s29_s13, %s726_s23  ;;  %p732_p5 = scmp.lt.s32.totalorder %s726_s23, %s726_s23 }
   0xd   :  { %p733_p6 = por %p732_p5, %p731_p4 }
   0xf   :  { %p734_p7 = pnand %p733_p6, %p727_p3 }
  0x11   :  { %737 = shalt.err (!%p734_p7)
}
  0x12   :  { %s812_s24 = smov 128   ;;  %s813_s25 = smov 8  }
  0x13   :  { %34 = dma.hbm_to_vmem [thread:$0]  %s1058_s1, 2048, %s29_s13, [#allocation6], %s812_s24, %s812_s24, %s813_s25  }
  0x14   :  { %s738_s30 = scalar_lea.hbm %s1057_s0, 2560 }
  0x15   :  { %p739_p8 = scmp.ne.s32.totalorder %s1057_s0, %s738_s30  ;;  %p742_p9 = scmp.lt.u32.totalorder %s738_s30, %s1057_s0 }
  0x17   :  { %p744_p10 = pnand %p742_p9, %p739_p8 }
  0x19   :  { %747 = shalt.err (!%p744_p10)
}
  0x1a   :  { %s748_s8 = scalar_lea.vmem %s839_s15, 2560  ;;  %p753_p12 = scmp.lt.s32.totalorder %s839_s15, %s839_s15 }
  0x1b   :  { %p749_p11 = scmp.ne.s32.totalorder %s839_s15, %s748_s8  ;;  %p754_p13 = scmp.lt.s32.totalorder %s748_s8, %s748_s8 }
  0x1d   :  { %p755_p0 = por %p754_p13, %p753_p12 }
  0x1f   :  { %p756_p1 = pnand %p755_p0, %p749_p11 }
  0x21   :  { %759 = shalt.err (!%p756_p1)
}
  0x22   :  { %22 = dma.hbm_to_vmem [thread:$0]  %s1057_s0, 2560, %s839_s15, [#allocation3], %s812_s24, %s812_s24, %s813_s25  }
  0x23   :  { %s814_s10 = smov [#allocation7]   ;;  %s760_s14 = scalar_lea.hbm %s1059_s2, 384 }
  0x24   :  { %s40_s11 = sshll.u32 %s814_s10, 4  ;;  %p761_p2 = scmp.ne.s32.totalorder %s1059_s2, %s760_s14  ;;  %s41_s11 = int_to_ptr.vmem [resolvable:$true] %s40_s11 }
  0x25   :  { %p764_p3 = scmp.lt.u32.totalorder %s760_s14, %s1059_s2 }
  0x27   :  { %p766_p4 = pnand %p764_p3, %p761_p2 }
  0x29   :  { %769 = shalt.err (!%p766_p4)
}
  0x2a   :  { %s770_s20 = scalar_lea.vmem %s41_s11, 384  ;;  %p775_p6 = scmp.lt.s32.totalorder %s41_s11, %s41_s11 }
  0x2b   :  { %p771_p5 = scmp.ne.s32.totalorder %s41_s11, %s770_s20  ;;  %p776_p7 = scmp.lt.s32.totalorder %s770_s20, %s770_s20 }
  0x2d   :  { %p777_p8 = por %p776_p7, %p775_p6 }
  0x2f   :  { %p778_p9 = pnand %p777_p8, %p771_p5 }
  0x31   :  { %781 = shalt.err (!%p778_p9)
}
  0x32   :  { %46 = dma.hbm_to_vmem [thread:$0]  %s1059_s2, 384, %s41_s11, [#allocation6], %s812_s24, %s812_s24, %s813_s25  }
  0x33   :  { %804 = dma.done.wait [#allocation3], 2560  }
  0x34   :  { %805 = vsyncadd [#allocation3], 4294964736 }
  0x35   :  { %806 = dma.done.wait [#allocation6], 2432  }
  0x36   :  { %807 = vsyncadd [#allocation6], 4294964864  ;;  %v80_v0 = vld [vmem:[#allocation5] sm:$0xff]  ;;  %v81_v1 = vld [vmem:[#allocation5 + $0x8] sm:$0xff]  ;;  %vm395_vm3 = vcmask 261120   ;;  %vm479_vm13 = vcmask 523264  }
  0x37   :  { %v82_v2 = vld [vmem:[#allocation5 + $0x10] sm:$0xff]  ;;  %v605_v3 = vpack.c.bf16 %v81_v1, %v80_v0  ;;  %v83_v4 = vld [vmem:[#allocation5 + $0x18] sm:$0xff]  ;;  %v84_v6 = vld [vmem:[#allocation5 + $0x20] sm:$0xff]  ;;  %s818_s2 = smov [#allocation8]   ;;  %vm481_vm14 = vcmask 517120  }
  0x38   :  { %v609_v5 = vpack.c.bf16 %v83_v4, %v82_v2  ;;  %v85_v7 = vld [vmem:[#allocation5 + $0x28] sm:$0xff]  ;;  %v60_v9 = vld [vmem:[#allocation2] sm:$0xff]  ;;  %v86_v10 = vld [vmem:[#allocation5 + $0x30] sm:$0xff]  ;;  %s488_s21 = sshll.u32 %s818_s2, 4  ;;  %s489_s21 = int_to_ptr.vmem [resolvable:$true] %s488_s21 }
  0x39   :  { %606 = vmatprep.subr.bf16.mxu0 %v605_v3  ;;  %v613_v8 = vpack.c.bf16 %v85_v7, %v84_v6  ;;  %v87_v11 = vld [vmem:[#allocation5 + $0x38] sm:$0xff]  ;;  %575 = vmatprep.mubr.f32.mxu0 %v60_v9  ;;  %v88_v13 = vld [vmem:[#allocation5 + $0x40] sm:$0xff]  ;;  %v89_v14 = vld [vmem:[#allocation5 + $0x48] sm:$0xff]  ;;  %s782_s22 = scalar_lea.vmem %s489_s21, 256  ;;  %p787_p11 = scmp.lt.s32.totalorder %s489_s21, %s489_s21 }
  0x3a   :  { %608 = vmatpush3.bf16.msra.mxu0 %v605_v3  ;;  %v617_v12 = vpack.c.bf16 %v87_v11, %v86_v10  ;;  %v621_v15 = vpack.c.bf16 %v89_v14, %v88_v13  ;;  %v90_v16 = vld [vmem:[#allocation5 + $0x50] sm:$0xff]  ;;  %v91_v17 = vld [vmem:[#allocation5 + $0x58] sm:$0xff]  ;;  %v92_v19 = vld [vmem:[#allocation5 + $0x60] sm:$0xff]  ;;  %p783_p10 = scmp.ne.s32.totalorder %s489_s21, %s782_s22  ;;  %p788_p12 = scmp.lt.s32.totalorder %s782_s22, %s782_s22 }
  0x3b   :  { %610 = vmatprep.subr.bf16.mxu0 %v609_v5  ;;  %v625_v18 = vpack.c.bf16 %v91_v17, %v90_v16  ;;  %v93_v20 = vld [vmem:[#allocation5 + $0x68] sm:$0xff]  ;;  %v94_v22 = vld [vmem:[#allocation5 + $0x70] sm:$0xff]  ;;  %v95_v23 = vld [vmem:[#allocation5 + $0x78] sm:$0xff] }
  0x3c   :  { %v629_v21 = vpack.c.bf16 %v93_v20, %v92_v19  ;;  %v633_v24 = vpack.c.bf16 %v95_v23, %v94_v22  ;;  %v61_v25 = vld [vmem:[#allocation2 + $0x8] sm:$0xff]  ;;  %v62_v26 = vld [vmem:[#allocation2 + $0x10] sm:$0xff]  ;;  %v63_v27 = vld [vmem:[#allocation2 + $0x18] sm:$0xff]  ;;  %p789_p13 = por %p788_p12, %p787_p11 }
  0x3d   :  { %v64_v28 = vld [vmem:[#allocation2 + $0x20] sm:$0xff]  ;;  %v65_v29 = vld [vmem:[#allocation2 + $0x28] sm:$0xff]  ;;  %v66_v30 = vld [vmem:[#allocation2 + $0x30] sm:$0xff] }
  0x3e   :  { %612 = vmatpush3.bf16.msra.mxu0 %v609_v5  ;;  %v67_v31 = vld [vmem:[#allocation2 + $0x38] sm:$0xff]  ;;  %v68_v32 = vld [vmem:[#allocation2 + $0x40] sm:$0xff]  ;;  %v69_v33 = vld [vmem:[#allocation2 + $0x48] sm:$0xff]  ;;  %p790_p0 = pnand %p789_p13, %p783_p10 }
  0x3f   :  { %614 = vmatprep.subr.bf16.mxu0 %v613_v8  ;;  %v70_v34 = vld [vmem:[#allocation2 + $0x50] sm:$0xff]  ;;  %v71_v35 = vld [vmem:[#allocation2 + $0x58] sm:$0xff]  ;;  %v72_v36 = vld [vmem:[#allocation2 + $0x60] sm:$0xff] }
  0x40   :  { %v73_v37 = vld [vmem:[#allocation2 + $0x68] sm:$0xff]  ;;  %v74_v38 = vld [vmem:[#allocation2 + $0x70] sm:$0xff]  ;;  %v75_v39 = vld [vmem:[#allocation2 + $0x78] sm:$0xff] }
  0x41   :  { %v76_v40 = vld [vmem:[#allocation2 + $0x80] sm:$0xff]  ;;  %v77_v41 = vld [vmem:[#allocation2 + $0x88] sm:$0xff]  ;;  %v78_v42 = vld [vmem:[#allocation2 + $0x90] sm:$0xff] }
  0x42   :  { %616 = vmatpush3.bf16.msra.mxu0 %v613_v8  ;;  %v79_v43 = vld [vmem:[#allocation2 + $0x98] sm:$0xff]  ;;  %v891_v44 = vld [vmem:[#allocation7 + $0x10] ss:$0 sm:$0xff]  ;;  %v917_v58 = vld [vmem:[#allocation7 + $0x11] ss:$0 sm:$0xff] }
  0x43   :  { %618 = vmatprep.subr.bf16.mxu0 %v617_v12 }
  0x46   :  { %620 = vmatpush3.bf16.msra.mxu0 %v617_v12 }
  0x47   :  { %622 = vmatprep.subr.bf16.mxu0 %v621_v15 }
  0x4a   :  { %624 = vmatpush3.bf16.msra.mxu0 %v621_v15 }
  0x4b   :  { %626 = vmatprep.subr.bf16.mxu0 %v625_v18 }
  0x4e   :  { %628 = vmatpush3.bf16.msra.mxu0 %v625_v18 }
  0x4f   :  { %630 = vmatprep.subr.bf16.mxu0 %v629_v21 }
  0x52   :  { %632 = vmatpush3.bf16.msra.mxu0 %v629_v21 }
  0x53   :  { %634 = vmatprep.subr.bf16.mxu0 %v633_v24 }
  0x56   :  { %636 = vmatpush3.bf16.msra.mxu0 %v633_v24 }
  0x59   :  { %576 = vmatmul.mubr.f32.vlgmr.msra.gmra.mrb[0].mxu0 %v61_v25 }
  0x5a   :  { %578 = vmatprep.mubr.f32.mxu0 %v62_v26 }
  0x5d   :  { %579 = vmatmul.mubr.f32.gmra.mrb[2].mxu0 %v63_v27 }
  0x5e   :  { %581 = vmatprep.mubr.f32.mxu0 %v64_v28 }
  0x61   :  { %582 = vmatmul.mubr.f32.gmra.mrb[4].mxu0 %v65_v29 }
  0x62   :  { %584 = vmatprep.mubr.f32.mxu0 %v66_v30 }
  0x65   :  { %585 = vmatmul.mubr.f32.gmra.mrb[6].mxu0 %v67_v31 }
  0x66   :  { %587 = vmatprep.mubr.f32.mxu0 %v68_v32 }
  0x69   :  { %588 = vmatmul.mubr.f32.gmra.mrb[8].mxu0 %v69_v33 }
  0x6a   :  { %590 = vmatprep.mubr.f32.mxu0 %v70_v34 }
  0x6d   :  { %591 = vmatmul.mubr.f32.gmra.mrb[10].mxu0 %v71_v35 }
  0x6e   :  { %593 = vmatprep.mubr.f32.mxu0 %v72_v36 }
  0x71   :  { %594 = vmatmul.mubr.f32.gmra.mrb[12].mxu0 %v73_v37 }
  0x72   :  { %596 = vmatprep.mubr.f32.mxu0 %v74_v38 }
  0x75   :  { %597 = vmatmul.mubr.f32.gmra.mrb[14].mxu0 %v75_v39 }
  0x76   :  { %599 = vmatprep.mubr.f32.mxu0 %v76_v40 }
  0x79   :  { %600 = vmatmul.mubr.f32.gmra.mrb[16].mxu0 %v77_v41 }
  0x7a   :  { %602 = vmatprep.mubr.f32.mxu0 %v78_v42 }
  0x7d   :  { %603 = vmatmul.mubr.f32.gmra.mrb[18].mxu0 %v79_v43 }
 0x12c   :  { %v577_v45 = vpop.f32.mrb[0].mxu0 }
 0x12d   :  { %v166_v46 = vpop.f32.mrb[1].mxu0  ;;  %v894_v47 = vadd.f32 %v577_v45, %v891_v44 }
 0x12e   :  { %v897_v48 = vadd.f32 %v891_v44, %v166_v46 }
 0x130   :  { %676 = vtanh.f32 %v897_v48  ;;  %v580_v49 = vpop.f32.mrb[2].mxu0 }
 0x131   :  { %v901_v50 = vadd.f32 %v580_v49, %v891_v44  ;;  %v176_v51 = vpop.f32.mrb[3].mxu0  ;;  %678 = vtanh.f32 %v894_v47 }
 0x132   :  { %v905_v52 = vadd.f32 %v891_v44, %v176_v51 }
 0x133   :  { %680 = vtanh.f32 %v901_v50 }
 0x134   :  { %v583_v53 = vpop.f32.mrb[4].mxu0  ;;  %682 = vtanh.f32 %v905_v52 }
 0x135   :  { %v910_v54 = vadd.f32 %v583_v53, %v891_v44  ;;  %v186_v55 = vpop.f32.mrb[5].mxu0  ;;  %v815_v53 = vmov 0.0|0.0  }
 0x136   :  { %v913_v56 = vadd.f32 %v891_v44, %v186_v55  ;;  %637 = vmatprep.subr.bf16.mxu1 %v815_v53 }
 0x137   :  { %684 = vtanh.f32 %v910_v54 }
 0x138   :  { %686 = vtanh.f32 %v913_v56  ;;  %v586_v57 = vpop.f32.mrb[6].mxu0 }
 0x139   :  { %v920_v59 = vadd.f32 %v586_v57, %v891_v44  ;;  %v196_v60 = vpop.f32.mrb[7].mxu0 }
 0x13a   :  { %v677_v61 = vpop.eup %676  ;;  %v923_v62 = vadd.f32 %v891_v44, %v196_v60 }
 0x13b   :  { %688 = vtanh.f32 %v920_v59  ;;  %v289_v63 = vmul.f32 %v677_v61, %v917_v58  ;;  %v679_v0 = vpop.eup %678 }
 0x13c   :  { %690 = vtanh.f32 %v923_v62  ;;  %v589_v1 = vpop.f32.mrb[8].mxu0  ;;  %v290_v8 = vmul.f32 %v679_v0, %v917_v58 }
 0x13d   :  { %v681_v2 = vpop.eup %680  ;;  %v929_v3 = vadd.f32 %v589_v1, %v891_v44  ;;  %v206_v4 = vpop.f32.mrb[9].mxu0  ;;  %309 = vadd.xlane.f32.xlu0 %v289_v63 }
 0x13e   :  { %v932_v5 = vadd.f32 %v891_v44, %v206_v4  ;;  %v292_v6 = vmul.f32 %v681_v2, %v917_v58  ;;  %v683_v7 = vpop.eup %682 }
 0x13f   :  { %692 = vtanh.f32 %v929_v3  ;;  %v291_v15 = vmul.f32 %v683_v7, %v917_v58 }
 0x140   :  { %694 = vtanh.f32 %v932_v5  ;;  %v592_v9 = vpop.f32.mrb[10].mxu0  ;;  %315 = vadd.xlane.f32.xlu1 %v292_v6 }
 0x141   :  { %v685_v10 = vpop.eup %684  ;;  %v939_v11 = vadd.f32 %v592_v9, %v891_v44  ;;  %v216_v12 = vpop.f32.mrb[11].mxu0  ;;  %311 = vadd.xlane.f32.xlu0 %v290_v8 }
 0x142   :  { %v687_v13 = vpop.eup %686  ;;  %v942_v14 = vadd.f32 %v891_v44, %v216_v12  ;;  %v294_v18 = vmul.f32 %v685_v10, %v917_v58  ;;  %v349_v10 = vlaneseq }
 0x143   :  { %696 = vtanh.f32 %v939_v11  ;;  %v293_v16 = vmul.f32 %v687_v13, %v917_v58 }
 0x144   :  { %698 = vtanh.f32 %v942_v14  ;;  %v595_v17 = vpop.f32.mrb[12].mxu0  ;;  %313 = vadd.xlane.f32.xlu1 %v291_v15  ;;  %v350_v12 = vshrl.u32 %v349_v10, 7  ;;  %v353_v13 = vand.u32 127, %v349_v10 }
 0x145   :  { %v689_v19 = vpop.eup %688  ;;  %v950_v20 = vadd.f32 %v595_v17, %v891_v44  ;;  %v226_v21 = vpop.f32.mrb[13].mxu0  ;;  %317 = vadd.xlane.f32.xlu0 %v293_v16 }
 0x146   :  { %v691_v22 = vpop.eup %690  ;;  %v953_v23 = vadd.f32 %v891_v44, %v226_v21  ;;  %v296_v26 = vmul.f32 %v689_v19, %v917_v58  ;;  %v355_v15 = vmul.u32 16, %v350_v12  ;;  %v351_v16 = vadd.s32 8, %v350_v12 }
 0x147   :  { %700 = vtanh.f32 %v950_v20  ;;  %v295_v24 = vmul.f32 %v691_v22, %v917_v58  ;;  %v354_v17 = vadd.s32 128, %v353_v13  ;;  %v816_v22 = vmov 0.0  }
 0x148   :  { %702 = vtanh.f32 %v953_v23  ;;  %v598_v25 = vpop.f32.mrb[14].mxu0  ;;  %319 = vadd.xlane.f32.xlu1 %v294_v18  ;;  %v361_v18 = vadd.s32 16, %v355_v15  ;;  %v356_v19 = vmul.u32 16, %v351_v16  ;;  %vm357_vm4 = vcmp.ge.s32.totalorder %v353_v13, %v355_v15 }
 0x149   :  { %v693_v27 = vpop.eup %692  ;;  %v960_v28 = vadd.f32 %v598_v25, %v891_v44  ;;  %v236_v29 = vpop.f32.mrb[15].mxu0  ;;  %321 = vadd.xlane.f32.xlu0 %v295_v24  ;;  %vm358_vm0 = vcmp.ge.s32.totalorder %v354_v17, %v355_v15 }
 0x14a   :  { %v695_v30 = vpop.eup %694  ;;  %v963_v31 = vadd.f32 %v891_v44, %v236_v29  ;;  %v298_v34 = vmul.f32 %v693_v27, %v917_v58  ;;  %vm364_vm1 = vcmp.lt.s32.totalorder %v354_v17, %v361_v18  ;;  %vm363_vm5 = vcmp.lt.s32.totalorder %v353_v13, %v361_v18  ;;  %v59_v18 = vld [vmem:[#allocation7 + $0x8] sm:$0x3] }
 0x14b   :  { %704 = vtanh.f32 %v960_v28  ;;  %v297_v32 = vmul.f32 %v695_v30, %v917_v58  ;;  %vm368_vm2 = vmand %vm358_vm0, %vm364_vm1  ;;  %vm360_vm6 = vcmp.ge.s32.totalorder %v354_v17, %v356_v19  ;;  %v362_v21 = vadd.s32 16, %v356_v19 }
 0x14c   :  { %706 = vtanh.f32 %v963_v31  ;;  %v601_v33 = vpop.f32.mrb[16].mxu0  ;;  %323 = vadd.xlane.f32.xlu1 %v296_v26  ;;  %vm996_vm7 = vmand %vm357_vm4, %vm363_vm5  ;;  %vm359_vm10 = vcmp.ge.s32.totalorder %v353_v13, %v356_v19 }
 0x14d   :  { %v697_v35 = vpop.eup %696  ;;  %v970_v36 = vadd.f32 %v601_v33, %v891_v44  ;;  %v246_v37 = vpop.f32.mrb[17].mxu0  ;;  %325 = vadd.xlane.f32.xlu0 %v297_v32  ;;  %vm366_vm8 = vcmp.lt.s32.totalorder %v354_v17, %v362_v21  ;;  %vm365_vm11 = vcmp.lt.s32.totalorder %v353_v13, %v362_v21  ;;  %v817_v17 = vmov 1.0  }
 0x14e   :  { %v699_v38 = vpop.eup %698  ;;  %v973_v39 = vadd.f32 %v891_v44, %v246_v37  ;;  %v300_v42 = vmul.f32 %v697_v35, %v917_v58  ;;  %vm370_vm9 = vmand %vm360_vm6, %vm366_vm8 }
 0x14f   :  { %708 = vtanh.f32 %v970_v36  ;;  %v299_v40 = vmul.f32 %v699_v38, %v917_v58  ;;  %v1001_v25 = vsel %vm370_vm9, 1.0, %v816_v22  ;;  %vm1003_vm12 = vmand %vm359_vm10, %vm365_vm11 }
 0x150   :  { %710 = vtanh.f32 %v973_v39  ;;  %v604_v41 = vpop.f32.mrb[18].mxu0  ;;  %327 = vadd.xlane.f32.xlu1 %v298_v34 }
 0x151   :  { %v701_v43 = vpop.eup %700  ;;  %v980_v45 = vadd.f32 %v604_v41, %v891_v44  ;;  %v256_v46 = vpop.f32.mrb[19].mxu0  ;;  %329 = vadd.xlane.f32.xlu0 %v299_v40 }
 0x152   :  { %v703_v49 = vpop.eup %702  ;;  %v983_v51 = vadd.f32 %v891_v44, %v256_v46  ;;  %v302_v57 = vmul.f32 %v701_v43, %v917_v58 }
 0x153   :  { %712 = vtanh.f32 %v980_v45  ;;  %v301_v55 = vmul.f32 %v703_v49, %v917_v58 }
 0x154   :  { %714 = vtanh.f32 %v983_v51  ;;  %331 = vadd.xlane.f32.xlu1 %v300_v42 }
 0x155   :  { %v705_v60 = vpop.eup %704  ;;  %333 = vadd.xlane.f32.xlu0 %v301_v55 }
 0x156   :  { %v707_v61 = vpop.eup %706  ;;  %v304_v44 = vmul.f32 %v705_v60, %v917_v58 }
 0x157   :  { %v303_v63 = vmul.f32 %v707_v61, %v917_v58 }
 0x158   :  { %335 = vadd.xlane.f32.xlu1 %v302_v57 }
 0x159   :  { %v709_v0 = vpop.eup %708  ;;  %337 = vadd.xlane.f32.xlu0 %v303_v63 }
 0x15a   :  { %v711_v1 = vpop.eup %710  ;;  %v306_v4 = vmul.f32 %v709_v0, %v917_v58 }
 0x15b   :  { %v305_v2 = vmul.f32 %v711_v1, %v917_v58 }
 0x15c   :  { %339 = vadd.xlane.f32.xlu1 %v304_v44 }
 0x15d   :  { %v713_v6 = vpop.eup %712  ;;  %341 = vadd.xlane.f32.xlu0 %v305_v2 }
 0x15e   :  { %v715_v7 = vpop.eup %714  ;;  %v308_v9 = vmul.f32 %v713_v6, %v917_v58 }
 0x15f   :  { %v307_v8 = vmul.f32 %v715_v7, %v917_v58  ;;  %v372_v58 = vsel %vm368_vm2, 1.0, %v816_v22 }
 0x160   :  { %343 = vadd.xlane.f32.xlu1 %v306_v4  ;;  %503 = vmatprep.mubr.msk.f32.mxu1 %vm395_vm3, %v372_v58 }
 0x161   :  { %345 = vadd.xlane.f32.xlu0 %v307_v8 }
 0x164   :  { %347 = vadd.xlane.f32.xlu1 %v308_v9 }
 0x1ca   :  { %v310_v27 = vpop.xlane.xlu0 %309 }
 0x1cb   :  { %v375_v32 = vmul.f32 %v310_v27, %v897_v48 }
 0x1cd   :  { %v316_v29 = vpop.xlane.xlu1 %315 }
 0x1ce   :  { %v312_v30 = vpop.xlane.xlu0 %311  ;;  %v378_v37 = vmul.f32 %v316_v29, %v901_v50 }
 0x1cf   :  { %v376_v33 = vmul.f32 %v312_v30, %v894_v47 }
 0x1d1   :  { %v314_v34 = vpop.xlane.xlu1 %313  ;;  %v638_v35 = vpack.c.bf16 %v376_v33, %v375_v32 }
 0x1d2   :  { %v377_v38 = vmul.f32 %v314_v34, %v905_v52  ;;  %v318_v40 = vpop.xlane.xlu0 %317 }
 0x1d3   :  { %639 = vmatpush1.bf16.msra.mxu1 %v638_v35  ;;  %v379_v43 = vmul.f32 %v318_v40, %v913_v56 }
 0x1d4   :  { %v641_v41 = vpack.c.bf16 %v378_v37, %v377_v38  ;;  %640 = vmatprep.subr.bf16.mxu1 %v815_v53 }
 0x1d5   :  { %v320_v42 = vpop.xlane.xlu1 %319 }
 0x1d6   :  { %v380_v46 = vmul.f32 %v320_v42, %v910_v54  ;;  %v322_v49 = vpop.xlane.xlu0 %321 }
 0x1d7   :  { %642 = vmatpush1.bf16.msra.mxu1 %v641_v41  ;;  %v381_v50 = vmul.f32 %v322_v49, %v923_v62 }
 0x1d8   :  { %v644_v48 = vpack.c.bf16 %v380_v46, %v379_v43  ;;  %643 = vmatprep.subr.bf16.mxu1 %v815_v53 }
 0x1d9   :  { %v324_v47 = vpop.xlane.xlu1 %323 }
 0x1da   :  { %v382_v52 = vmul.f32 %v324_v47, %v920_v59  ;;  %v326_v55 = vpop.xlane.xlu0 %325 }
 0x1db   :  { %645 = vmatpush1.bf16.msra.mxu1 %v644_v48  ;;  %v383_v56 = vmul.f32 %v326_v55, %v932_v5 }
 0x1dc   :  { %v647_v57 = vpack.c.bf16 %v382_v52, %v381_v50  ;;  %646 = vmatprep.subr.bf16.mxu1 %v815_v53 }
 0x1dd   :  { %v328_v60 = vpop.xlane.xlu1 %327 }
 0x1de   :  { %v384_v54 = vmul.f32 %v328_v60, %v929_v3  ;;  %v330_v61 = vpop.xlane.xlu0 %329 }
 0x1df   :  { %648 = vmatpush1.bf16.msra.mxu1 %v647_v57  ;;  %v385_v62 = vmul.f32 %v330_v61, %v942_v14 }
 0x1e0   :  { %v650_v63 = vpack.c.bf16 %v384_v54, %v383_v56  ;;  %649 = vmatprep.subr.bf16.mxu1 %v815_v53 }
 0x1e1   :  { %v332_v44 = vpop.xlane.xlu1 %331 }
 0x1e2   :  { %v386_v59 = vmul.f32 %v332_v44, %v939_v11  ;;  %v334_v0 = vpop.xlane.xlu0 %333 }
 0x1e3   :  { %651 = vmatpush1.bf16.msra.mxu1 %v650_v63  ;;  %v387_v5 = vmul.f32 %v334_v0, %v953_v23 }
 0x1e4   :  { %v653_v1 = vpack.c.bf16 %v386_v59, %v385_v62  ;;  %652 = vmatprep.subr.bf16.mxu1 %v815_v53 }
 0x1e5   :  { %v336_v2 = vpop.xlane.xlu1 %335 }
 0x1e6   :  { %v388_v3 = vmul.f32 %v336_v2, %v950_v20  ;;  %v338_v4 = vpop.xlane.xlu0 %337 }
 0x1e7   :  { %654 = vmatpush1.bf16.msra.mxu1 %v653_v1  ;;  %v389_v14 = vmul.f32 %v338_v4, %v963_v31 }
 0x1e8   :  { %v656_v6 = vpack.c.bf16 %v388_v3, %v387_v5  ;;  %655 = vmatprep.subr.bf16.mxu1 %v815_v53 }
 0x1e9   :  { %v340_v7 = vpop.xlane.xlu1 %339 }
 0x1ea   :  { %v390_v11 = vmul.f32 %v340_v7, %v960_v28  ;;  %v342_v8 = vpop.xlane.xlu0 %341 }
 0x1eb   :  { %657 = vmatpush1.bf16.msra.mxu1 %v656_v6  ;;  %v391_v23 = vmul.f32 %v342_v8, %v973_v39 }
 0x1ec   :  { %v659_v9 = vpack.c.bf16 %v390_v11, %v389_v14  ;;  %658 = vmatprep.subr.bf16.mxu1 %v815_v53 }
 0x1ed   :  { %v344_v10 = vpop.xlane.xlu1 %343 }
 0x1ee   :  { %v392_v20 = vmul.f32 %v344_v10, %v970_v36  ;;  %v346_v12 = vpop.xlane.xlu0 %345  ;;  %v58_v36 = vld [vmem:[#allocation7] sm:$0xff] }
 0x1ef   :  { %660 = vmatpush1.bf16.msra.mxu1 %v659_v9  ;;  %v393_v31 = vmul.f32 %v346_v12, %v983_v51 }
 0x1f0   :  { %v662_v13 = vpack.c.bf16 %v392_v20, %v391_v23  ;;  %661 = vmatprep.subr.bf16.mxu1 %v815_v53 }
 0x1f1   :  { %v348_v15 = vpop.xlane.xlu1 %347 }
 0x1f2   :  { %v394_v28 = vmul.f32 %v348_v15, %v980_v45 }
 0x1f3   :  { %663 = vmatpush1.bf16.msra.mxu1 %v662_v13 }
 0x1f4   :  { %v665_v16 = vpack.c.bf16 %v394_v28, %v393_v31  ;;  %664 = vmatprep.subr.bf16.mxu1 %v815_v53 }
 0x1f7   :  { %666 = vmatpush1.bf16.msra.mxu1 %v665_v16 }
 0x1fa   :  { %504 = vmatmul.mubr.msk.f32.vlgmr.msra.gmra.mrb[0].mxu1 %vm996_vm7, %v817_v17 }
 0x1fb   :  { %505 = vmatprep.mubr.msk.f32.mxu1 %vm395_vm3, %v1001_v25 }
 0x1fe   :  { %506 = vmatmul.mubr.msk.f32.gmra.mrb[2].mxu1 %vm1003_vm12, %v817_v17 }
 0x2cd   :  { %v468_v39 = vpop.f32.mrb[0].mxu1 }
 0x2ce   :  { %v477_v51 = vadd.f32 %v468_v39, %v58_v36  ;;  %v470_v45 = vpop.f32.mrb[1].mxu1 }
 0x2d0   :  { %480 = vst.msk [vmem:[#allocation8] sm:$0xff] %vm479_vm13, %v477_v51 }
 0x2d1   :  { %v473_v53 = vpop.f32.mrb[2].mxu1 }
 0x2d2   :  { %v478_v19 = vadd.f32 %v473_v53, %v59_v18  ;;  %v475_v21 = vpop.f32.mrb[3].mxu1 }
 0x2d4   :  { %482 = vst.msk [vmem:[#allocation8 + $0x8] sm:$0x3] %vm481_vm14, %v478_v19 }
 0x2d5   :  { %793 = shalt.err (!%p790_p0)
}
 0x2d6   :  { %s794_s27 = scalar_lea.hbm %s1060_s3, 256 }
 0x2d7   :  { %p795_p1 = scmp.ne.s32.totalorder %s1060_s3, %s794_s27  ;;  %p798_p2 = scmp.lt.u32.totalorder %s794_s27, %s1060_s3 }
 0x2d9   :  { %p800_p3 = pnand %p798_p2, %p795_p1 }
 0x2db   :  { %803 = shalt.err (!%p800_p3)
}
 0x2dc   :  { %494 = dma.vmem_to_hbm [thread:$0]  %s489_s21, 256, %s1060_s3, [#allocation4], %s812_s24, %s812_s24, %s813_s25  }
 0x2dd   :  { %808 = dma.done.wait [#allocation4], 256  }
 0x2de   :  { %809 = vsyncadd [#allocation4], 4294967040 }
 0x2df   :  { %498 = vsyncpa [#allocation3], 1 }
 0x2e0   :  { %499 = vsyncpa [#allocation6], 1 }
 0x2e1   :  { %500 = vsyncpa [#allocation4], 1 }

</bundles_post_ra>
